<compile_context>
chip_gen: v5e
topology: v5e:2x2
jax: 0.10.0
libtpu: 0.0.40
codegen_flags: <defaults>
</compile_context>

<pallas_src>
import functools

import jax
import jax.numpy as jnp
import numpy as np
from jax import lax
from jax.experimental import pallas as pl
from jax.experimental.pallas import tpu as pltpu


def _round_up(x, m):
    return -(-x // m) * m


def _fused_conv_prelu_kernel(x_ref, w_ref, alpha_ref, out_ref, patches_ref, *,
                             kh, kw, wp, lchunk, win_len, dilation):
    """One (batch, output-lane-chunk) grid step.

    x_ref:       (Cin, Lpad)          whole zero-padded, spatially-flattened image (VMEM)
    w_ref:       (Cout, KH*KW*Cin)    dense weight tile (VMEM, fetched once)
    alpha_ref:   (1,)                 shared PReLU slope (SMEM scalar)
    out_ref:     (Cout, LCHUNK)       lane-dense output chunk (LCHUNK % 128 == 0)
    patches_ref: (KH*KW*Cin, LCHUNK)  im2col scratch (VMEM), fully rewritten every step
    """
    cin = x_ref.shape[0]
    base = pl.multiple_of(pl.program_id(1) * lchunk, lchunk)
    # One 128-aligned dynamic window load; every tap shift below is a static slice of it.
    xwin = x_ref[:, pl.ds(base, win_len)]                     # (Cin, LCHUNK + halo)
    for i in range(kh):                                       # static, fully unrolled taps
        for j in range(kw):
            t = i * kw + j
            off = i * dilation * wp + j * dilation            # static element offset of tap
            patches_ref[t * cin:(t + 1) * cin, :] = xwin[:, off:off + lchunk]
    # Single MXU matmul with K = KH*KW*Cin (replaces KH*KW tiny K=Cin matmuls).
    y = jnp.dot(w_ref[...], patches_ref[...], preferred_element_type=jnp.float32)
    alpha = alpha_ref[0]                                      # scalar read from SMEM
    out_ref[...] = jnp.where(y > 0, y, alpha * y).astype(out_ref.dtype)


def basic_conv_forward(x_nchw, conv_w, prelu_alpha, *, stride=1, padding=0,
                       dilation=1, max_lchunk=2048, trim_output=True):
    """BasicConv.forward: Conv2d (bias=False, groups=1) followed by PReLU.

    x_nchw:      [N, Cin, H, W]       (PyTorch NCHW, kept end-to-end)
    conv_w:      [Cout, Cin, KH, KW]  (PyTorch OIHW)
    prelu_alpha: scalar               (nn.PReLU() single shared parameter)
    returns      [N, Cout, Ho, Wo]    (or the padded-stride layout if trim_output=False)
    """
    n, cin, h, w = x_nchw.shape
    cout, cin_w, kh, kw = conv_w.shape
    if cin_w != cin:
        raise NotImplementedError("groups != 1 is not supported")

    eff_kh = (kh - 1) * dilation + 1
    eff_kw = (kw - 1) * dilation + 1
    hp, wp = h + 2 * padding, w + 2 * padding
    ho1 = hp - eff_kh + 1                 # stride-1 output height (kernel always computes this)
    wo1 = wp - eff_kw + 1
    ho = (hp - eff_kh) // stride + 1
    wo = (wp - eff_kw) // stride + 1

    acc_w = ho1 * wp                      # flat stride-1 output length (row stride Wp)
    max_off = (kh - 1) * dilation * wp + (kw - 1) * dilation

    # Output lane-chunk size: multiple of 128, capped, and dividing the padded output.
    lchunk = min(_round_up(acc_w, 128), _round_up(max_lchunk, 128))
    # v7x: with N == 1 make sure there are >= 2 parallel grid units (2 TensorCores per chip).
    if n == 1 and _round_up(acc_w, lchunk) // lchunk < 2 and acc_w > 128:
        lchunk = _round_up(_round_up(acc_w, 128) // 2, 128)
    acc_w_pad = _round_up(acc_w, lchunk)
    nchunk = acc_w_pad // lchunk
    halo = _round_up(max_off, 128) if max_off > 0 else 0
    win_len = lchunk + halo
    l_pad = acc_w_pad + halo              # always >= hp*wp, and a multiple of 128

    # ---- glue (single cheap pass, no replication): spatial zero-pad + flatten ----
    xp = x_nchw
    if padding:
        xp = jnp.pad(xp, ((0, 0), (0, 0), (padding, padding), (padding, padding)))
    x_flat = xp.reshape(n, cin, hp * wp)
    if l_pad > hp * wp:
        x_flat = jnp.pad(x_flat, ((0, 0), (0, 0), (0, l_pad - hp * wp)))

    # Dense weight tile: w_dense[o, (i*KW + j)*Cin + c] = conv_w[o, c, i, j]
    kdim = kh * kw * cin
    w_dense = jnp.transpose(conv_w, (0, 2, 3, 1)).reshape(cout, kdim).astype(x_flat.dtype)

    alpha = jnp.asarray(prelu_alpha, jnp.float32).reshape((1,))

    kernel = functools.partial(_fused_conv_prelu_kernel, kh=kh, kw=kw, wp=wp,
                               lchunk=lchunk, win_len=win_len, dilation=dilation)

    out_flat = pl.pallas_call(
        kernel,
        out_shape=jax.ShapeDtypeStruct((n, cout, acc_w_pad), x_nchw.dtype),
        grid_spec=pltpu.PrefetchScalarGridSpec(
            num_scalar_prefetch=0,
            grid=(n, nchunk),                                    # (batch, output-lane-chunk)
            in_specs=[
                # Whole padded image; constant block index along the chunk axis -> fetched
                # once per image (trivially fits VMEM at DQN-scale shapes).
                pl.BlockSpec((None, cin, l_pad), lambda b, r: (b, 0, 0)),
                pl.BlockSpec((cout, kdim), lambda b, r: (0, 0)),  # dense weights, fetched once
                pl.BlockSpec(memory_space=pltpu.MemorySpace.SMEM),  # PReLU alpha (scalar path)
            ],
            out_specs=pl.BlockSpec((None, cout, lchunk), lambda b, r: (b, 0, r)),
            scratch_shapes=[pltpu.VMEM((kdim, lchunk), x_flat.dtype)],  # im2col scratch
        ),
        compiler_params=pltpu.CompilerParams(
            dimension_semantics=("parallel", "parallel")),
    )(x_flat, w_dense, alpha)

    if not trim_output and stride == 1:
        # Padded-row-stride layout (N, Cout, Ho, Wp): columns Wo..Wp-1 are benign garbage.
        # For consumers that tolerate the padding this avoids any trim work entirely.
        return out_flat[:, :, :acc_w].reshape(n, cout, ho1, wp)

    # Trim (fuses into the caller's jit; no standalone HBM round trip when jitted together).
    out = out_flat[:, :, :acc_w].reshape(n, cout, ho1, wp)[:, :, :, :wo1]
    if stride > 1:
        # TODO(synk): stride>1 computes the dense stride-1 output and subsamples here;
        # correct but does stride^2 extra work -- acceptable for small DQN frames.
        out = out[:, :, ::stride, ::stride]
    return out[:, :, :ho, :wo]


def _reference(x_nchw, conv_w, prelu_alpha, *, stride=1, padding=0, dilation=1):
    y = lax.conv_general_dilated(
        x_nchw, conv_w,
        window_strides=(stride, stride),
        padding=[(padding, padding), (padding, padding)],
        rhs_dilation=(dilation, dilation),
        dimension_numbers=("NCHW", "OIHW", "NCHW"),
    )
    return jnp.where(y > 0, y, prelu_alpha * y)


if __name__ == "__main__":
    # Small shapes consistent with the module: batch=2, in_channels=4, out_channels=8,
    # kernel_size=3, spatial=16.
    N, CIN, H, W = 2, 4, 16, 16
    COUT, KH, KW = 8, 3, 3

    key = jax.random.PRNGKey(0)
    kx, kw_ = jax.random.split(key)
    x = jax.random.normal(kx, (N, CIN, H, W), dtype=jnp.float32)
    conv_w = jax.random.normal(kw_, (COUT, CIN, KH, KW), dtype=jnp.float32) * 0.1
    prelu_alpha = 0.25  # nn.PReLU() default init

    # Config 1: the module's typical setting (stride=1, padding=1).
    fwd1 = jax.jit(functools.partial(basic_conv_forward, stride=1, padding=1, dilation=1))
    out1 = jax.block_until_ready(fwd1(x, conv_w, prelu_alpha))
    ref1 = _reference(x, conv_w, prelu_alpha, stride=1, padding=1, dilation=1)
    assert out1.shape == (N, COUT, H, W), out1.shape
    assert np.allclose(np.asarray(out1), np.asarray(ref1), atol=1e-4, rtol=1e-4)

    # Config 2: strided + dilated path (kernel computes dense stride-1; wrapper subsamples).
    fwd2 = jax.jit(functools.partial(basic_conv_forward, stride=2, padding=1, dilation=2))
    out2 = jax.block_until_ready(fwd2(x, conv_w, prelu_alpha))
    ref2 = _reference(x, conv_w, prelu_alpha, stride=2, padding=1, dilation=2)
    assert out2.shape == ref2.shape, (out2.shape, ref2.shape)
    assert np.allclose(np.asarray(out2), np.asarray(ref2), atol=1e-4, rtol=1e-4)

    print("KERNEL_OK")
</pallas_src>

<mosaic_0001>
module attributes {stable_mosaic.version = 11 : i64} {
  func.func @_fused_conv_prelu_kernel(%arg0: i32, %arg1: i32, %arg2: memref<1x4x512xf32, #tpu.memory_space<vmem>>, %arg3: memref<8x36xf32, #tpu.memory_space<vmem>>, %arg4: memref<1xf32, #tpu.memory_space<smem>>, %arg5: memref<1x8x384xf32, #tpu.memory_space<vmem>>, %arg6: memref<36x384xf32, #tpu.memory_space<vmem>>) attributes {dimension_semantics = [#tpu.dimension_semantics<parallel>, #tpu.dimension_semantics<parallel>], iteration_bounds = array<i64: 2, 1>, scalar_prefetch = 0 : i64, scratch_operands = 1 : i64, tpu.core_type = #tpu.core_type<tc>, window_params = [{transform_indices = @transform_0, window_bounds = array<i64: 1, 4, 512>}, {pipeline_mode = #tpu.pipeline_mode<synchronous>, transform_indices = @transform_1, window_bounds = array<i64: 8, 36>}, {transform_indices = @transform_2, window_bounds = array<i64: 1>}, {transform_indices = @transform_3, window_bounds = array<i64: 1, 8, 384>}]} {
    %c384_i32 = arith.constant 384 : i32
    %0 = arith.muli %arg1, %c384_i32 : i32
    %1 = tpu.assume_multiple %0, 384 : i32
    %c0 = arith.constant 0 : index
    %c0_0 = arith.constant 0 : index
    %2 = arith.index_cast %1 : i32 to index
    %3 = vector.load %arg2[%c0, %c0_0, %2] : memref<1x4x512xf32, #tpu.memory_space<vmem>>, vector<1x4x512xf32>
    %4 = vector.shape_cast %3 : vector<1x4x512xf32> to vector<4x512xf32>
    %5 = vector.extract_strided_slice %4 {offsets = [0, 0], sizes = [4, 384], strides = [1, 1]} : vector<4x512xf32> to vector<4x384xf32>
    %c0_1 = arith.constant 0 : index
    %c0_2 = arith.constant 0 : index
    %6 = vector.load %arg6[%c0_1, %c0_2] : memref<36x384xf32, #tpu.memory_space<vmem>>, vector<4x384xf32>
    tpu.vector_store %arg6[%c0_1, %c0_2], %5 {strides = array<i32>} : memref<36x384xf32, #tpu.memory_space<vmem>>, vector<4x384xf32>,
    %7 = vector.extract_strided_slice %4 {offsets = [0, 1], sizes = [4, 384], strides = [1, 1]} : vector<4x512xf32> to vector<4x384xf32>
    %c4 = arith.constant 4 : index
    %c0_3 = arith.constant 0 : index
    %8 = vector.load %arg6[%c4, %c0_3] : memref<36x384xf32, #tpu.memory_space<vmem>>, vector<4x384xf32>
    tpu.vector_store %arg6[%c4, %c0_3], %7 {strides = array<i32>} : memref<36x384xf32, #tpu.memory_space<vmem>>, vector<4x384xf32>,
    %9 = vector.extract_strided_slice %4 {offsets = [0, 2], sizes = [4, 384], strides = [1, 1]} : vector<4x512xf32> to vector<4x384xf32>
    %c8 = arith.constant 8 : index
    %c0_4 = arith.constant 0 : index
    %10 = vector.load %arg6[%c8, %c0_4] : memref<36x384xf32, #tpu.memory_space<vmem>>, vector<4x384xf32>
    tpu.vector_store %arg6[%c8, %c0_4], %9 {strides = array<i32>} : memref<36x384xf32, #tpu.memory_space<vmem>>, vector<4x384xf32>,
    %11 = vector.extract_strided_slice %4 {offsets = [0, 18], sizes = [4, 384], strides = [1, 1]} : vector<4x512xf32> to vector<4x384xf32>
    %c12 = arith.constant 12 : index
    %c0_5 = arith.constant 0 : index
    %12 = vector.load %arg6[%c12, %c0_5] : memref<36x384xf32, #tpu.memory_space<vmem>>, vector<4x384xf32>
    tpu.vector_store %arg6[%c12, %c0_5], %11 {strides = array<i32>} : memref<36x384xf32, #tpu.memory_space<vmem>>, vector<4x384xf32>,
    %13 = vector.extract_strided_slice %4 {offsets = [0, 19], sizes = [4, 384], strides = [1, 1]} : vector<4x512xf32> to vector<4x384xf32>
    %c16 = arith.constant 16 : index
    %c0_6 = arith.constant 0 : index
    %14 = vector.load %arg6[%c16, %c0_6] : memref<36x384xf32, #tpu.memory_space<vmem>>, vector<4x384xf32>
    tpu.vector_store %arg6[%c16, %c0_6], %13 {strides = array<i32>} : memref<36x384xf32, #tpu.memory_space<vmem>>, vector<4x384xf32>,
    %15 = vector.extract_strided_slice %4 {offsets = [0, 20], sizes = [4, 384], strides = [1, 1]} : vector<4x512xf32> to vector<4x384xf32>
    %c20 = arith.constant 20 : index
    %c0_7 = arith.constant 0 : index
    %16 = vector.load %arg6[%c20, %c0_7] : memref<36x384xf32, #tpu.memory_space<vmem>>, vector<4x384xf32>
    tpu.vector_store %arg6[%c20, %c0_7], %15 {strides = array<i32>} : memref<36x384xf32, #tpu.memory_space<vmem>>, vector<4x384xf32>,
    %17 = vector.extract_strided_slice %4 {offsets = [0, 36], sizes = [4, 384], strides = [1, 1]} : vector<4x512xf32> to vector<4x384xf32>
    %c24 = arith.constant 24 : index
    %c0_8 = arith.constant 0 : index
    %18 = vector.load %arg6[%c24, %c0_8] : memref<36x384xf32, #tpu.memory_space<vmem>>, vector<4x384xf32>
    tpu.vector_store %arg6[%c24, %c0_8], %17 {strides = array<i32>} : memref<36x384xf32, #tpu.memory_space<vmem>>, vector<4x384xf32>,
    %19 = vector.extract_strided_slice %4 {offsets = [0, 37], sizes = [4, 384], strides = [1, 1]} : vector<4x512xf32> to vector<4x384xf32>
    %c28 = arith.constant 28 : index
    %c0_9 = arith.constant 0 : index
    %20 = vector.load %arg6[%c28, %c0_9] : memref<36x384xf32, #tpu.memory_space<vmem>>, vector<4x384xf32>
    tpu.vector_store %arg6[%c28, %c0_9], %19 {strides = array<i32>} : memref<36x384xf32, #tpu.memory_space<vmem>>, vector<4x384xf32>,
    %21 = vector.extract_strided_slice %4 {offsets = [0, 38], sizes = [4, 384], strides = [1, 1]} : vector<4x512xf32> to vector<4x384xf32>
    %c32 = arith.constant 32 : index
    %c0_10 = arith.constant 0 : index
    %22 = vector.load %arg6[%c32, %c0_10] : memref<36x384xf32, #tpu.memory_space<vmem>>, vector<4x384xf32>
    tpu.vector_store %arg6[%c32, %c0_10], %21 {strides = array<i32>} : memref<36x384xf32, #tpu.memory_space<vmem>>, vector<4x384xf32>,
    %c0_11 = arith.constant 0 : index
    %c0_12 = arith.constant 0 : index
    %23 = vector.load %arg3[%c0_11, %c0_12] : memref<8x36xf32, #tpu.memory_space<vmem>>, vector<8x36xf32>
    %c0_13 = arith.constant 0 : index
    %c0_14 = arith.constant 0 : index
    %24 = vector.load %arg6[%c0_13, %c0_14] : memref<36x384xf32, #tpu.memory_space<vmem>>, vector<36x384xf32>
    %cst = arith.constant dense<0.000000e+00> : vector<8x384xf32>
    %25 = tpu.matmul %23, %24, %cst {dimension_numbers = #tpu.dot_dimension_numbers<[1], [0], [0], [1], [0, 0, 1, 1], [], []>} : vector<8x36xf32>, vector<36x384xf32>, vector<8x384xf32> -> vector<8x384xf32>
    %c0_15 = arith.constant 0 : index
    %26 = memref.load %arg4[%c0_15] : memref<1xf32, #tpu.memory_space<smem>>
    %cst_16 = arith.constant 0.000000e+00 : f32
    %27 = vector.broadcast %cst_16 : f32 to vector<8x384xf32>
    %28 = arith.cmpf ogt, %25, %27 : vector<8x384xf32>
    %29 = vector.broadcast %26 : f32 to vector<8x384xf32>
    %30 = arith.mulf %29, %25 : vector<8x384xf32>
    %31 = arith.select %28, %25, %30 : vector<8x384xi1>, vector<8x384xf32>
    %c0_17 = arith.constant 0 : index
    %c0_18 = arith.constant 0 : index
    %c0_19 = arith.constant 0 : index
    %32 = vector.load %arg5[%c0_17, %c0_18, %c0_19] : memref<1x8x384xf32, #tpu.memory_space<vmem>>, vector<1x8x384xf32>
    %33 = vector.shape_cast %32 : vector<1x8x384xf32> to vector<8x384xf32>
    %34 = vector.shape_cast %31 : vector<8x384xf32> to vector<1x8x384xf32>
    tpu.vector_store %arg5[%c0_17, %c0_18, %c0_19], %34 {strides = array<i32>} : memref<1x8x384xf32, #tpu.memory_space<vmem>>, vector<1x8x384xf32>,
    return
  }
  func.func @transform_0(%arg0: i32, %arg1: i32) -> (i32, i32, i32) {
    %c0_i32 = arith.constant 0 : i32
    %c0_i32_0 = arith.constant 0 : i32
    %c0_i32_1 = arith.constant 0 : i32
    return %arg0, %c0_i32, %c0_i32_0 : i32, i32, i32
  }
  func.func @transform_1(%arg0: i32, %arg1: i32) -> (i32, i32) {
    %c0_i32 = arith.constant 0 : i32
    %c0_i32_0 = arith.constant 0 : i32
    %c0_i32_1 = arith.constant 0 : i32
    return %c0_i32, %c0_i32_0 : i32, i32
  }
  func.func @transform_2(%arg0: i32, %arg1: i32) -> i32 {
    %c0_i32 = arith.constant 0 : i32
    %c0_i32_0 = arith.constant 0 : i32
    return %c0_i32 : i32
  }
  func.func @transform_3(%arg0: i32, %arg1: i32) -> (i32, i32, i32) {
    %c0_i32 = arith.constant 0 : i32
    %c0_i32_0 = arith.constant 0 : i32
    return %arg0, %c0_i32, %arg1 : i32, i32, i32
  }
}

</mosaic_0001>

<bundles_post_ra>
// kernel: basic_conv_forward.1
= control target key start
LH: loop header
LB: loop body
LE: loop exit
PB: predicated region body
PF: predicated region fallthrough
CT: control target
= control target key end

     0   :  { %s712_s14 = smov 0   ;;  %s714_s15 = smov 0   ;;  %s821_s0 = inlined_call_operand.vmem [shape: f32[2,4,512], index: 0, kind: input, shape index: {}]   ;;  %s822_s1 = inlined_call_operand.vmem [shape: f32[8,36], index: 1, kind: input, shape index: {}]   ;;  %s823_s2 = inlined_call_operand.<no memory space> [shape: f32[1], index: 2, kind: input, shape index: {}]   ;;  %s824_s3 = inlined_call_operand.vmem [shape: f32[2,8,384], index: 3, kind: output, shape index: {}]  }
   0x1   :  { %8 = sst [smem:[#allocation3]] %s823_s2  ;;  %s716_s16 = smov 0  }
   0x2 LB: > { %s26_s2 = sadd.s32 1, %s675_s15  ;;  %p611_p0 = scmp.ge.s32.totalorder %s679_s16, 1  ;;  %s679_s16 = sphi %s716_s16, %s14_s16   ;;  %s675_s15 = sphi %s714_s15, %s826_s15   ;;  %s671_s14 = sphi %s712_s14, %s825_s14  }
   0x3   : > { %p28_p1 = scmp.ge.s32.totalorder %s26_s2, 2  ;;  %p152_p2 = scmp.lt.s32.totalorder %s679_s16, 3 }
   0x5   : > { %s828_s2 = smov (%p28_p1, %s26_s2), 0  ;;  %p153_p3 = pnand %p611_p0, %p152_p2 }
   0x6   : > { %p180_p4 = scmp.lt.s32.totalorder (!%p153_p3), %s671_s14, 1  ;;  %s681_s21 = smov (!%p153_p3), 127  }
   0x7   : > { %156 = sbr.rel (%p153_p3) target bundleno = 384 (0x180), region = 32  ;;  %s682_s22 = smov (!%p153_p3), 126  }
   0x8   : > { %s683_s23 = smov (!%p153_p3), 110   ;;  %s684_s24 = smov (!%p153_p3), 109  }
   0x9   : > { %s685_s25 = smov (!%p153_p3), 108   ;;  %s686_s26 = smov (!%p153_p3), 92  }
   0xa   : > { %s687_s27 = smov (!%p153_p3), 91   ;;  %s688_s28 = smov (!%p153_p3), 90  }
   0xb   : > { %s510_s4 = sld [smem:[#allocation3]] (!%p153_p3) }
   0xc   : > { %s830_s14 = smov (!%p180_p4, %s671_s14), 1  ;;  %vm232_vm0 = vcmask 1039360   ;;  %vm257_vm1 = vcmask 1031168   ;;  %vm283_vm2 = vcmask 900096   ;;  %vm308_vm3 = vcmask 891904  }
   0xd   : > { %s623_s17 = sshll.u32 %s830_s14, 4  ;;  %vm334_vm4 = vcmask 883712   ;;  %vm385_vm5 = vcmask 744448   ;;  %vm359_vm6 = vcmask 752640   ;;  %vm410_vm7 = vcmask 736256   ;;  %s624_s5 = smul.u32 24, %s830_s14 }
   0xe   : > { %s184_s20 = scalar_lea.vmem %s821_s0, %s623_s17  ;;  %vm440_vm8 = vcmask 1043456   ;;  %vm436_vm9 = vcmask 293888  }
   0xf   : > { %v736_v0 = vld [vmem:[%s184_s20 + $0x8] sm:$0xff]  ;;  %v738_v1 = vld [vmem:[%s184_s20] sm:$0xff]  ;;  %s193_s8 = scalar_lea.vmem %s824_s3, %s624_s5 }
  0x10   : > { %206 = vst [vmem:[#allocation1 + $0x10] ss:$2 sm:$0xff] %v736_v0 }
  0x11   : > { %204 = vst [vmem:[#allocation1] ss:$2 sm:$0xff] %v738_v1 }
  0x17   : > { %v209_v2 = vld.sshfl [vmem:[#allocation1 + $0x10] sm:$0xff pattern:$0x75316420] }
  0x18   : > { %219 = vst [vmem:[#allocation1 + $0x11] ss:$2 sm:$0xff] %v736_v0  ;;  %v207_v3 = vld.sshfl [vmem:[#allocation1] sm:$0xff pattern:$0x75316420] }
  0x19   : > { %215 = vst [vmem:[#allocation2 + $0x58] sm:$0xf] %v209_v2  ;;  %v208_v4 = vld.sshfl [vmem:[#allocation1 + $0x8] sm:$0xff pattern:$0x75316420] }
  0x1a   : > { %217 = vst [vmem:[#allocation1 + $0x1] ss:$2 sm:$0xff] %v738_v1 }
  0x1b   : > { %213 = vst [vmem:[#allocation2 + $0x30] sm:$0xf] %v207_v3 }
  0x1c   : > { %214 = vst [vmem:[#allocation2] sm:$0xf] %v208_v4 }
  0x1f   : > { %v222_v5 = vld.sshfl [vmem:[#allocation1 + $0x10] sm:$0xff pattern:$0x75316420]  ;;  %v223_v6 = vld.sshfl [vmem:[#allocation1 + $0x18] sm:$0xff pattern:$0x75316420] }
  0x20   : > { %228 = vrot.lane.b32.xlu1 %v222_v5, %s681_s21  ;;  %230 = vrot.lane.b32.xlu2 %v223_v6, %s681_s21  ;;  %244 = vst [vmem:[#allocation1 + $0x10] ss:$2 sm:$0xff] %v736_v0 }
  0x21   : > { %v747_v7 = vld.sshfl [vmem:[#allocation1] sm:$0xff pattern:$0x75316420]  ;;  %v749_v8 = vld.sshfl [vmem:[#allocation1 + $0x8] sm:$0xff pattern:$0x75316420] }
  0x22   : > { %242 = vst [vmem:[#allocation1] ss:$2 sm:$0xff] %v738_v1 }
  0x27   : > { %v247_v9 = vld.sshfl [vmem:[#allocation1 + $0x10] sm:$0xff pattern:$0x75316420]  ;;  %v248_v10 = vld.sshfl [vmem:[#allocation1 + $0x18] sm:$0xff pattern:$0x75316420] }
  0x28   : > { %253 = vrot.lane.b32.xlu1 %v247_v9, %s682_s22  ;;  %255 = vrot.lane.b32.xlu2 %v248_v10, %s682_s22  ;;  %270 = vst [vmem:[#allocation1 + $0x11] ss:$2 sm:$0xff] %v736_v0 }
  0x29   : > { %v245_v11 = vld.sshfl [vmem:[#allocation1] sm:$0xff pattern:$0x75316420]  ;;  %v246_v12 = vld.sshfl [vmem:[#allocation1 + $0x8] sm:$0xff pattern:$0x75316420] }
  0x2a   : > { %268 = vst [vmem:[#allocation1 + $0x1] ss:$2 sm:$0xff] %v738_v1 }
  0x2f   : > { %v274_v13 = vld.sshfl [vmem:[#allocation1 + $0x18] sm:$0xff pattern:$0x75316420]  ;;  %v273_v14 = vld.sshfl [vmem:[#allocation1 + $0x10] sm:$0xff pattern:$0x75316420] }
  0x30   : > { %281 = vrot.lane.b32.xlu1 %v274_v13, %s683_s23  ;;  %279 = vrot.lane.b32.xlu0 %v273_v14, %s683_s23  ;;  %295 = vst [vmem:[#allocation1 + $0x10] ss:$2 sm:$0xff] %v736_v0 }
  0x31   : > { %v271_v15 = vld.sshfl [vmem:[#allocation1] sm:$0xff pattern:$0x75316420]  ;;  %v272_v16 = vld.sshfl [vmem:[#allocation1 + $0x8] sm:$0xff pattern:$0x75316420] }
  0x32   : > { %293 = vst [vmem:[#allocation1] ss:$2 sm:$0xff] %v738_v1 }
  0x37   : > { %v299_v17 = vld.sshfl [vmem:[#allocation1 + $0x18] sm:$0xff pattern:$0x75316420]  ;;  %v298_v18 = vld.sshfl [vmem:[#allocation1 + $0x10] sm:$0xff pattern:$0x75316420] }
  0x38   : > { %306 = vrot.lane.b32.xlu1 %v299_v17, %s684_s24  ;;  %304 = vrot.lane.b32.xlu0 %v298_v18, %s684_s24  ;;  %321 = vst [vmem:[#allocation1 + $0x11] ss:$2 sm:$0xff] %v736_v0 }
  0x39   : > { %v297_v19 = vld.sshfl [vmem:[#allocation1 + $0x8] sm:$0xff pattern:$0x75316420]  ;;  %v296_v20 = vld.sshfl [vmem:[#allocation1] sm:$0xff pattern:$0x75316420] }
  0x3a   : > { %302 = vrot.lane.b32.xlu2 %v297_v19, %s684_s24  ;;  %319 = vst [vmem:[#allocation1 + $0x1] ss:$2 sm:$0xff] %v738_v1 }
  0x3f   : > { %v325_v21 = vld.sshfl [vmem:[#allocation1 + $0x18] sm:$0xff pattern:$0x75316420]  ;;  %v324_v22 = vld.sshfl [vmem:[#allocation1 + $0x10] sm:$0xff pattern:$0x75316420] }
  0x40   : > { %332 = vrot.lane.b32.xlu0 %v325_v21, %s685_s25  ;;  %346 = vst [vmem:[#allocation1 + $0x10] ss:$2 sm:$0xff] %v736_v0  ;;  %300 = vrot.lane.b32.xlu1 %v296_v20, %s684_s24 }
  0x41   : > { %v322_v23 = vld.sshfl [vmem:[#allocation1] sm:$0xff pattern:$0x75316420]  ;;  %v323_v24 = vld.sshfl [vmem:[#allocation1 + $0x8] sm:$0xff pattern:$0x75316420] }
  0x42   : > { %330 = vrot.lane.b32.xlu2 %v324_v22, %s685_s25  ;;  %344 = vst [vmem:[#allocation1] ss:$2 sm:$0xff] %v738_v1 }
  0x47   : > { %v349_v25 = vld.sshfl [vmem:[#allocation1 + $0x10] sm:$0xff pattern:$0x75316420]  ;;  %v350_v26 = vld.sshfl [vmem:[#allocation1 + $0x18] sm:$0xff pattern:$0x75316420] }
  0x48   : > { %355 = vrot.lane.b32.xlu1 %v349_v25, %s686_s26  ;;  %372 = vst [vmem:[#allocation1 + $0x11] ss:$2 sm:$0xff] %v736_v0  ;;  %326 = vrot.lane.b32.xlu0 %v322_v23, %s685_s25 }
  0x49   : > { %v347_v27 = vld.sshfl [vmem:[#allocation1] sm:$0xff pattern:$0x75316420]  ;;  %v348_v28 = vld.sshfl [vmem:[#allocation1 + $0x8] sm:$0xff pattern:$0x75316420] }
  0x4a   : > { %249 = vrot.lane.b32.xlu2 %v245_v11, %s682_s22  ;;  %370 = vst [vmem:[#allocation1 + $0x1] ss:$2 sm:$0xff] %v738_v1 }
  0x4f   : > { %v375_v29 = vld.sshfl [vmem:[#allocation1 + $0x10] sm:$0xff pattern:$0x75316420]  ;;  %v376_v30 = vld.sshfl [vmem:[#allocation1 + $0x18] sm:$0xff pattern:$0x75316420] }
  0x50   : > { %357 = vrot.lane.b32.xlu1 %v350_v26, %s686_s26  ;;  %351 = vrot.lane.b32.xlu0 %v347_v27, %s686_s26  ;;  %397 = vst [vmem:[#allocation1 + $0x10] ss:$2 sm:$0xff] %v736_v0 }
  0x51   : > { %v374_v31 = vld.sshfl [vmem:[#allocation1 + $0x8] sm:$0xff pattern:$0x75316420]  ;;  %v373_v32 = vld.sshfl [vmem:[#allocation1] sm:$0xff pattern:$0x75316420] }
  0x52   : > { %381 = vrot.lane.b32.xlu2 %v375_v29, %s687_s27  ;;  %395 = vst [vmem:[#allocation1] ss:$2 sm:$0xff] %v738_v1 }
  0x57   : > { %v400_v33 = vld.sshfl [vmem:[#allocation1 + $0x10] sm:$0xff pattern:$0x75316420]  ;;  %v401_v35 = vld.sshfl [vmem:[#allocation1 + $0x18] sm:$0xff pattern:$0x75316420] }
  0x58   : > { %353 = vrot.lane.b32.xlu1 %v348_v28, %s686_s26  ;;  %251 = vrot.lane.b32.xlu0 %v246_v12, %s682_s22 }
  0x59   : > { %v398_v34 = vld.sshfl [vmem:[#allocation1] sm:$0xff pattern:$0x75316420]  ;;  %v399_v36 = vld.sshfl [vmem:[#allocation1 + $0x8] sm:$0xff pattern:$0x75316420] }
  0x5a   : > { %383 = vrot.lane.b32.xlu2 %v376_v30, %s687_s27 }
  0x60   : > { %328 = vrot.lane.b32.xlu1 %v323_v24, %s685_s25  ;;  %379 = vrot.lane.b32.xlu0 %v374_v31, %s687_s27 }
  0x62   : > { %377 = vrot.lane.b32.xlu2 %v373_v32, %s687_s27 }
  0x68   : > { %275 = vrot.lane.b32.xlu1 %v271_v15, %s683_s23  ;;  %406 = vrot.lane.b32.xlu0 %v400_v33, %s688_s28 }
  0x6a   : > { %402 = vrot.lane.b32.xlu2 %v398_v34, %s688_s28  ;;  %v420_v34 = vld [vmem:[%s822_s1] sm:$0xff] }
  0x70   : > { %226 = vrot.lane.b32.xlu1 %v749_v8, %s681_s21  ;;  %408 = vrot.lane.b32.xlu0 %v401_v35, %s688_s28 }
  0x72   : > { %277 = vrot.lane.b32.xlu2 %v272_v16, %s683_s23 }
  0x78   : > { %404 = vrot.lane.b32.xlu0 %v399_v36, %s688_s28 }
  0x7a   : > { %v231_v37 = vpop.permute.xlu2 %230 }
  0x80   : > { %224 = vrot.lane.b32.xlu0 %v747_v7, %s681_s21 }
  0x82   : > { %v256_v38 = vpop.permute.xlu2 %255 }
  0x92   : > { %v780_v39 = vpop.permute.xlu1 %228 }
  0x93   : > { %v235_v40 = vsel %vm232_vm0, %v780_v39, %v231_v37 }
  0x94   : > { %241 = vst [vmem:[#allocation2 + $0x58] sm:$0xf0] %v235_v40  ;;  %v303_v41 = vpop.permute.xlu2 %302 }
  0x9a   : > { %v254_v42 = vpop.permute.xlu1 %253 }
  0x9b   : > { %v260_v43 = vsel %vm257_vm1, %v254_v42, %v256_v38  ;;  %v423_v36 = vld [vmem:[#allocation2 + $0x58] sm:$0xff] }
  0x9c   : > { %266 = vst [vmem:[#allocation2 + $0x68] sm:$0xf] %v260_v43  ;;  %v331_v44 = vpop.permute.xlu2 %330 }
  0xa2   : > { %v282_v45 = vpop.permute.xlu1 %281  ;;  %v280_v46 = vpop.permute.xlu0 %279 }
  0xa3   : > { %v286_v47 = vsel %vm283_vm2, %v280_v46, %v282_v45  ;;  %v514_v45 = vstv %s510_s4 }
  0xa4   : > { %292 = vst [vmem:[#allocation2 + $0x68] sm:$0xf0] %v286_v47  ;;  %v250_v48 = vpop.permute.xlu2 %249 }
  0xaa   : > { %v307_v49 = vpop.permute.xlu1 %306  ;;  %v305_v50 = vpop.permute.xlu0 %304 }
  0xab   : > { %v310_v51 = vsel %vm308_vm3, %v303_v41, %v305_v50  ;;  %v311_v52 = vsel %vm308_vm3, %v305_v50, %v307_v49  ;;  %v426_v30 = vld [vmem:[#allocation2 + $0x68] sm:$0xff] }
  0xac   : > { %316 = vst [vmem:[#allocation2 + $0x48] sm:$0xf] %v310_v51  ;;  %v382_v53 = vpop.permute.xlu2 %381 }
  0xad   : > { %317 = vst [vmem:[#allocation2 + $0x40] sm:$0xf] %v311_v52 }
  0xb2   : > { %v333_v54 = vpop.permute.xlu0 %332  ;;  %v301_v55 = vpop.permute.xlu1 %300 }
  0xb3   : > { %v337_v56 = vsel %vm334_vm4, %v331_v44, %v333_v54  ;;  %v309_v57 = vsel %vm308_vm3, %v301_v55, %v303_v41 }
  0xb4   : > { %343 = vst [vmem:[#allocation2 + $0x40] sm:$0xf0] %v337_v56  ;;  %v384_v58 = vpop.permute.xlu2 %383 }
  0xb5   : > { %v388_v59 = vsel %vm385_vm5, %v382_v53, %v384_v58  ;;  %315 = vst [vmem:[#allocation2 + $0x8] sm:$0xf] %v309_v57 }
  0xb6   : > { %394 = vst [vmem:[#allocation2 + $0x38] sm:$0xf0] %v388_v59 }
  0xba   : > { %v356_v60 = vpop.permute.xlu1 %355  ;;  %v327_v61 = vpop.permute.xlu0 %326 }
  0xbb   : > { %v429_v29 = vld [vmem:[#allocation2 + $0x40] sm:$0xff] }
  0xbc   : > { %v378_v62 = vpop.permute.xlu2 %377 }
  0xc2   : > { %v358_v63 = vpop.permute.xlu1 %357  ;;  %v352_v0 = vpop.permute.xlu0 %351 }
  0xc3   : > { %v362_v1 = vsel %vm359_vm6, %v356_v60, %v358_v63 }
  0xc4   : > { %368 = vst [vmem:[#allocation2 + $0x38] sm:$0xf] %v362_v1  ;;  %v403_v2 = vpop.permute.xlu2 %402 }
  0xca   : > { %v354_v3 = vpop.permute.xlu1 %353  ;;  %v252_v4 = vpop.permute.xlu0 %251 }
  0xcb   : > { %v360_v5 = vsel %vm359_vm6, %v352_v0, %v354_v3  ;;  %v361_v6 = vsel %vm359_vm6, %v354_v3, %v356_v60  ;;  %v258_v7 = vsel %vm257_vm1, %v250_v48, %v252_v4  ;;  %v259_v8 = vsel %vm257_vm1, %v252_v4, %v254_v42  ;;  %v432_v28 = vld [vmem:[#allocation2 + $0x38] sm:$0xff] }
  0xcc   : > { %366 = vst [vmem:[#allocation2 + $0x20] sm:$0xf] %v360_v5  ;;  %v278_v9 = vpop.permute.xlu2 %277 }
  0xcd   : > { %367 = vst [vmem:[#allocation2 + $0x10] sm:$0xf] %v361_v6  ;;  %v285_v10 = vsel %vm283_vm2, %v278_v9, %v280_v46 }
  0xce   : > { %264 = vst [vmem:[#allocation2 + $0x18] sm:$0xf] %v258_v7 }
  0xcf   : > { %265 = vst [vmem:[#allocation2 + $0x50] sm:$0xf] %v259_v8 }
  0xd0   : > { %291 = vst [vmem:[#allocation2 + $0x50] sm:$0xf0] %v285_v10 }
  0xd2   : > { %v329_v11 = vpop.permute.xlu1 %328  ;;  %v380_v12 = vpop.permute.xlu0 %379 }
  0xd3   : > { %v335_v13 = vsel %vm334_vm4, %v327_v61, %v329_v11  ;;  %v336_v14 = vsel %vm334_vm4, %v329_v11, %v331_v44  ;;  %v386_v15 = vsel %vm385_vm5, %v378_v62, %v380_v12  ;;  %v387_v16 = vsel %vm385_vm5, %v380_v12, %v382_v53 }
  0xd4   : > { %341 = vst [vmem:[#allocation2 + $0x8] sm:$0xf0] %v335_v13 }
  0xd5   : > { %342 = vst [vmem:[#allocation2 + $0x48] sm:$0xf0] %v336_v14 }
  0xd6   : > { %392 = vst [vmem:[#allocation2 + $0x20] sm:$0xf0] %v386_v15 }
  0xd7   : > { %393 = vst [vmem:[#allocation2 + $0x10] sm:$0xf0] %v387_v16  ;;  %v425_v42 = vld [vmem:[#allocation2 + $0x50] sm:$0xff] }
  0xda   : > { %v276_v17 = vpop.permute.xlu1 %275  ;;  %v407_v18 = vpop.permute.xlu0 %406 }
  0xdb   : > { %v284_v19 = vsel %vm283_vm2, %v276_v17, %v278_v9 }
  0xdc   : > { %290 = vst [vmem:[#allocation2 + $0x18] sm:$0xf0] %v284_v19  ;;  %v428_v40 = vld [vmem:[#allocation2 + $0x48] sm:$0xff] }
  0xdd   : > { %v430_v37 = vld [vmem:[#allocation2 + $0x20] sm:$0xff] }
  0xde   : > { %v431_v38 = vld [vmem:[#allocation2 + $0x10] sm:$0xff] }
  0xe2   : > { %v227_v20 = vpop.permute.xlu1 %226  ;;  %v409_v21 = vpop.permute.xlu0 %408 }
  0xe3   : > { %v234_v22 = vsel %vm232_vm0, %v227_v20, %v780_v39  ;;  %v413_v23 = vsel %vm410_vm7, %v407_v18, %v409_v21  ;;  %v427_v39 = vld [vmem:[#allocation2 + $0x8] sm:$0xff]  ;;  %v424_v41 = vld [vmem:[#allocation2 + $0x18] sm:$0xff] }
  0xe4   : > { %240 = vst [vmem:[#allocation2] sm:$0xf0] %v234_v22 }
  0xe5   : > { %419 = vst [vmem:[#allocation2 + $0x28] sm:$0xf] %v413_v23 }
  0xea   : > { %v405_v24 = vpop.permute.xlu0 %404 }
  0xeb   : > { %v411_v25 = vsel %vm410_vm7, %v403_v2, %v405_v24  ;;  %v412_v26 = vsel %vm410_vm7, %v405_v24, %v407_v18  ;;  %v422_v44 = vld [vmem:[#allocation2] sm:$0xff] }
  0xec   : > { %417 = vst [vmem:[#allocation2 + $0x60] sm:$0xf] %v411_v25  ;;  %v435_v27 = vld [vmem:[#allocation2 + $0x28] sm:$0xf] }
  0xed   : > { %418 = vst [vmem:[#allocation2 + $0x70] sm:$0xf] %v412_v26  ;;  %619 = vmatpush.msk.msra.mxu2 %vm440_vm8, %v435_v27 }
  0xef   : > { %502 = vmatpush.msra.mxu2 %v432_v28 }
  0xf1   : > { %503 = vmatpush.msra.mxu2 %v429_v29 }
  0xf2   : > { %v225_v31 = vpop.permute.xlu0 %224 }
  0xf3   : > { %504 = vmatpush.msra.mxu2 %v426_v30  ;;  %v233_v32 = vsel %vm232_vm0, %v225_v31, %v227_v20  ;;  %v433_v33 = vld [vmem:[#allocation2 + $0x60] sm:$0xf] }
  0xf4   : > { %239 = vst [vmem:[#allocation2 + $0x30] sm:$0xf0] %v233_v32  ;;  %615 = vmatpush.msk.msra.mxu0 %vm440_vm8, %v433_v33  ;;  %v434_v35 = vld [vmem:[#allocation2 + $0x70] sm:$0xf] }
  0xf5   : > { %617 = vmatpush.msk.msra.mxu1 %vm440_vm8, %v434_v35  ;;  %505 = vmatpush.msra.mxu2 %v423_v36 }
  0xf6   : > { %620 = vmatmul.msk.f32.vlgmr.msra.gmra.mxu2 %vm436_vm9, %v420_v34  ;;  %462 = vmatpush.msra.mxu0 %v430_v37 }
  0xf7   : > { %482 = vmatpush.msra.mxu1 %v431_v38 }
  0xf8   : > { %463 = vmatpush.msra.mxu0 %v427_v39 }
  0xf9   : > { %483 = vmatpush.msra.mxu1 %v428_v40 }
  0xfa   : > { %464 = vmatpush.msra.mxu0 %v424_v41 }
  0xfb   : > { %484 = vmatpush.msra.mxu1 %v425_v42  ;;  %v421_v43 = vld [vmem:[#allocation2 + $0x30] sm:$0xff] }
  0xfc   : > { %465 = vmatpush.msra.mxu0 %v421_v43 }
  0xfd   : > { %485 = vmatpush.msra.mxu1 %v422_v44  ;;  %616 = vmatmul.msk.f32.vlgmr.msra.gmra.mxu0 %vm436_vm9, %v420_v34 }
  0xfe   : > { %618 = vmatmul.msk.f32.vlgmr.msra.gmra.mxu1 %vm436_vm9, %v420_v34 }
 0x179   : > { %v507_v46 = vpop.f32.mrf.mxu2 }
 0x17a   : > { %vm513_vm10 = vcmp.gt.f32.partialorder %v507_v46, 0.0  ;;  %v517_v47 = vmul.f32 %v514_v45, %v507_v46  ;;  %v467_v48 = vpop.f32.mrf.mxu0 }
 0x17b   : > { %vm511_vm11 = vcmp.gt.f32.partialorder %v467_v48, 0.0  ;;  %v515_v49 = vmul.f32 %v514_v45, %v467_v48  ;;  %v487_v50 = vpop.f32.mrf.mxu1 }
 0x17c   : > { %v520_v51 = vsel %vm513_vm10, %v507_v46, %v517_v47  ;;  %vm512_vm12 = vcmp.gt.f32.partialorder %v487_v50, 0.0  ;;  %v516_v52 = vmul.f32 %v514_v45, %v487_v50 }
 0x17d   : > { %523 = vst [vmem:[%s193_s8 + $0x10] sm:$0xff] %v520_v51  ;;  %v518_v53 = vsel %vm511_vm11, %v467_v48, %v515_v49 }
 0x17e   : > { %521 = vst [vmem:[%s193_s8] sm:$0xff] %v518_v53  ;;  %v519_v54 = vsel %vm512_vm12, %v487_v50, %v516_v52 }
 0x17f   : > { %522 = vst [vmem:[%s193_s8 + $0x8] sm:$0xff] %v519_v54 }
 0x180 PF: > { %s14_s16 = sadd.s32 1, %s679_s16   ;;  %s825_s14 = smov %s675_s15 }
 0x181   : > { %p11_p5 = scmp.ge.s32.totalorder %s14_s16, 4   ;;  %s826_s15 = smov %s828_s2 }
 0x183   :  { %13 = sbr.rel (!%p11_p5) target bundleno = 2 (0x2), region = 76 }

</bundles_post_ra>
